<compile_context>
chip_gen: v7x
topology: tpu7x:2x2x1
jax: 0.10.0
libtpu: 0.0.40
codegen_flags: <defaults>
</compile_context>

<pallas_src>
import functools

import jax
import jax.numpy as jnp
from jax import lax
from jax.experimental import pallas as pl
from jax.experimental.pallas import tpu as pltpu


def democratic_kernel(x_ref, p_ref, out_ref, *, num_models, num_classes,
                      num_features):
    M, C, D = num_models, num_classes, num_features
    MC = M * C

    # --- Fused logits for all sub-models: ONE MXU matmul + one VPU bias add.
    #   logits_flat[0, m*C + c] = sum_d x[d] * W[m, d, c] + b[m, c]
    w2d = p_ref[pl.ds(0, D), pl.ds(0, MC)]                        # (D, M*C)
    logits_flat = jnp.dot(x_ref[...], w2d,
                          preferred_element_type=jnp.float32)     # (1, M*C)
    logits_flat = logits_flat + p_ref[pl.ds(D, 1), pl.ds(0, MC)]  # + bias row

    # --- Assemble an (M, C) view: model m on sublane m, classes on lanes.
    # Cheap broadcast+selects (no reshape/concat relayout risk).
    # TODO(synk): could be a single pltpu.roll(stride=C, stride_axis=0) + lane
    # slice, but that only saves tens of cycles under the per-call overhead
    # floor; keeping the known-good select assembly.
    row_ids = lax.broadcasted_iota(jnp.int32, (M, C), 0)
    logits_mc = jnp.zeros((M, C), jnp.float32)
    for m in range(M):
        seg = logits_flat[:, m * C:(m + 1) * C]                   # (1, C) static slice
        logits_mc = jnp.where(row_ids == m, seg, logits_mc)

    # --- Vectorized per-model argmax (ties -> smallest class, like torch.argmax):
    # one lane-max + one lane-min over the whole (M, C) tile.
    class_ids = lax.broadcasted_iota(jnp.int32, (M, C), 1)
    max_l = jnp.max(logits_mc, axis=1, keepdims=True)             # (M, 1)
    pred = jnp.min(jnp.where(logits_mc == max_l, class_ids, C),
                   axis=1, keepdims=True)                         # (M, 1) int32
    onehot = (class_ids == pred).astype(jnp.float32)              # (M, C)

    # --- Group sizes and summed vote weights per class (sublane reductions).
    # Vote weights live inside the params tile at lane offset M*C, already
    # broadcast across classes -> no extra DMA and no in-kernel broadcast.
    mw_mc = p_ref[pl.ds(0, M), pl.ds(MC, C)]                      # (M, C)
    counts = jnp.sum(onehot, axis=0, keepdims=True)               # (1, C)
    wsum = jnp.sum(mw_mc * onehot, axis=0, keepdims=True)         # (1, C)

    # confidence[c] = ((g+0.5)/(g+1)) * (group_weight/g) for non-empty groups,
    # folded into ONE divide (denominator guarded so empty groups stay finite
    # before the where-select).
    g = counts
    denom = jnp.maximum(g, 1.0) * (g + 1.0)
    conf = jnp.where(g > 0.0, wsum * (g + 0.5) / denom, -jnp.inf)  # (1, C)

    # --- Winner = class with max confidence.
    # TODO(synk): Python max(dict, key=...) tie-breaks by group insertion order
    # (class of the first model that voted for it); here ties break to the
    # smallest class index.
    best = jnp.max(conf, axis=1, keepdims=True)
    iota_1c = lax.broadcasted_iota(jnp.int32, (1, C), 1)
    winner = jnp.min(jnp.where(conf == best, iota_1c, C),
                     axis=1, keepdims=True)                       # (1, 1) int32
    # (1, 1) int32 output stays in VMEM (known-good lowering); SMEM routing
    # would only shave a masked vst and is not worth lowering risk at this size.
    out_ref[...] = winner.astype(jnp.int32)


def make_democratic_model(w, b, mw):
    """Build the ensemble ONCE; returns a jitted forward(x) -> (1,) int32.

    w: (M, D, C) per-model linear weights, b: (M, C) biases, mw: (M,) vote
    weights.  All parameter re-layout happens here at init time, not on the
    per-call path (per perf review: this was the single biggest lever).
    """
    M, D, C = w.shape
    MC = M * C
    assert M <= D + 1, "vote-weight packing assumes M <= D + 1"

    # Fused parameter tile, shape (D + 1, M*C + C):
    #   rows 0..D-1, cols 0..M*C-1  : W[m, d, c] stored at [d, m*C + c]
    #   row  D,      cols 0..M*C-1  : bias b[m, c]
    #   rows 0..M-1, cols M*C..+C-1 : vote weight mw[m] (broadcast over classes)
    w2d = jnp.transpose(w, (1, 0, 2)).reshape(D, MC).astype(jnp.float32)
    top = jnp.concatenate([w2d, b.reshape(1, MC).astype(jnp.float32)], axis=0)
    mw_block = jnp.broadcast_to(mw.astype(jnp.float32).reshape(M, 1), (M, C))
    right = jnp.concatenate(
        [mw_block, jnp.zeros((D + 1 - M, C), jnp.float32)], axis=0)
    params = jax.device_put(jnp.concatenate([top, right], axis=1))  # (D+1, (M+1)*C)

    kernel = functools.partial(democratic_kernel, num_models=M,
                               num_classes=C, num_features=D)
    call = pl.pallas_call(
        kernel,
        out_shape=jax.ShapeDtypeStruct((1, 1), jnp.int32),
        in_specs=[
            pl.BlockSpec(memory_space=pltpu.MemorySpace.VMEM),   # x (1, D)
            pl.BlockSpec(memory_space=pltpu.MemorySpace.VMEM),   # fused params
        ],
        out_specs=pl.BlockSpec(memory_space=pltpu.MemorySpace.VMEM),
        # Grid-less single invocation: at M=5, D=32, C=8, B=1 the call is
        # fixed-overhead bound.  A grid only pays off for a batched-vote
        # variant (then: grid over B tiles, lane-dense winner row, and
        # dimension_semantics=("parallel",) to use both v7x TensorCores).
    )

    def forward(x):
        if x.shape != (1, D):
            # The reference module's tensor-as-dict-key grouping is only well
            # defined for a single query; batching needs a different kernel.
            raise ValueError(f"expected x of shape (1, {D}), got {x.shape}")
        out = call(x, params)
        return out.reshape((1,))   # mirrors torch.argmax(m(x), dim=1) with B=1

    return jax.jit(forward)


def reference(x, w, b, mw):
    """Pure-JAX reference of the ensemble vote (same tie-breaking)."""
    M, _, C = w.shape
    logits = jnp.einsum('bd,mdc->mbc', x, w) + b[:, None, :]   # (M, 1, C)
    preds = jnp.argmax(logits, axis=-1)[:, 0]                  # (M,)
    onehot = jax.nn.one_hot(preds, C, dtype=jnp.float32)       # (M, C)
    counts = onehot.sum(0)
    wsum = (mw[:, None] * onehot).sum(0)
    laplace = (counts + 0.5) / (counts + 1.0)
    conf = jnp.where(counts > 0,
                     laplace * (wsum / jnp.maximum(counts, 1.0)),
                     -jnp.inf)
    return jnp.argmax(conf).astype(jnp.int32)


if __name__ == "__main__":
    # Small shapes: M=5 sub-models, D=32 features, C=8 classes, batch=1.
    M, D, C = 5, 32, 8
    key = jax.random.PRNGKey(0)
    kx, kw, kb = jax.random.split(key, 3)

    x = jax.random.normal(kx, (1, D), dtype=jnp.float32)
    w = jax.random.normal(kw, (M, D, C), dtype=jnp.float32) * 0.1
    b = jax.random.normal(kb, (M, C), dtype=jnp.float32) * 0.01
    mw = jnp.array([0.30, 0.20, 0.15, 0.25, 0.10], dtype=jnp.float32)  # vote weights

    model = make_democratic_model(w, b, mw)      # init-time weight prep (once)
    winner = jax.block_until_ready(model(x))     # per-call path touches only x
    ref_winner = jax.block_until_ready(reference(x, w, b, mw))

    assert winner.shape == (1,)
    assert int(winner[0]) == int(ref_winner), (winner, ref_winner)
    print("KERNEL_OK")
</pallas_src>

<mosaic_0001>
module attributes {stable_mosaic.version = 11 : i64} {
  func.func @democratic_kernel(%arg0: memref<1x32xf32, #tpu.memory_space<vmem>>, %arg1: memref<33x48xf32, #tpu.memory_space<vmem>>, %arg2: memref<1x1xi32, #tpu.memory_space<vmem>>) attributes {dimension_semantics = [], scalar_prefetch = 0 : i64, scratch_operands = 0 : i64, tpu.core_type = #tpu.core_type<tc>} {
    %c0 = arith.constant 0 : index
    %c0_0 = arith.constant 0 : index
    %0 = vector.load %arg1[%c0, %c0_0] : memref<33x48xf32, #tpu.memory_space<vmem>>, vector<32x40xf32>
    %c0_1 = arith.constant 0 : index
    %c0_2 = arith.constant 0 : index
    %1 = vector.load %arg0[%c0_1, %c0_2] : memref<1x32xf32, #tpu.memory_space<vmem>>, vector<1x32xf32>
    %cst = arith.constant dense<0.000000e+00> : vector<1x40xf32>
    %2 = tpu.matmul %1, %0, %cst {dimension_numbers = #tpu.dot_dimension_numbers<[1], [0], [0], [1], [0, 0, 1, 1], [], []>} : vector<1x32xf32>, vector<32x40xf32>, vector<1x40xf32> -> vector<1x40xf32>
    %c32 = arith.constant 32 : index
    %c0_3 = arith.constant 0 : index
    %3 = vector.load %arg1[%c32, %c0_3] : memref<33x48xf32, #tpu.memory_space<vmem>>, vector<1x40xf32>
    %4 = arith.addf %2, %3 : vector<1x40xf32>
    %5 = tpu.iota {dimensions = array<i32: 0>} : vector<5x8xi32>
    %cst_4 = arith.constant 0.000000e+00 : f32
    %6 = vector.broadcast %cst_4 : f32 to vector<5x8xf32>
    %7 = vector.extract_strided_slice %4 {offsets = [0, 0], sizes = [1, 8], strides = [1, 1]} : vector<1x40xf32> to vector<1x8xf32>
    %c0_i32 = arith.constant 0 : i32
    %8 = vector.broadcast %c0_i32 : i32 to vector<5x8xi32>
    %9 = arith.cmpi eq, %5, %8 : vector<5x8xi32>
    %10 = vector.shape_cast %7 : vector<1x8xf32> to vector<1x8xf32>
    %11 = vector.broadcast %10 : vector<1x8xf32> to vector<5x8xf32>
    %12 = arith.select %9, %11, %6 : vector<5x8xi1>, vector<5x8xf32>
    %13 = vector.extract_strided_slice %4 {offsets = [0, 8], sizes = [1, 8], strides = [1, 1]} : vector<1x40xf32> to vector<1x8xf32>
    %c1_i32 = arith.constant 1 : i32
    %14 = vector.broadcast %c1_i32 : i32 to vector<5x8xi32>
    %15 = arith.cmpi eq, %5, %14 : vector<5x8xi32>
    %16 = vector.shape_cast %13 : vector<1x8xf32> to vector<1x8xf32>
    %17 = vector.broadcast %16 : vector<1x8xf32> to vector<5x8xf32>
    %18 = arith.select %15, %17, %12 : vector<5x8xi1>, vector<5x8xf32>
    %19 = vector.extract_strided_slice %4 {offsets = [0, 16], sizes = [1, 8], strides = [1, 1]} : vector<1x40xf32> to vector<1x8xf32>
    %c2_i32 = arith.constant 2 : i32
    %20 = vector.broadcast %c2_i32 : i32 to vector<5x8xi32>
    %21 = arith.cmpi eq, %5, %20 : vector<5x8xi32>
    %22 = vector.shape_cast %19 : vector<1x8xf32> to vector<1x8xf32>
    %23 = vector.broadcast %22 : vector<1x8xf32> to vector<5x8xf32>
    %24 = arith.select %21, %23, %18 : vector<5x8xi1>, vector<5x8xf32>
    %25 = vector.extract_strided_slice %4 {offsets = [0, 24], sizes = [1, 8], strides = [1, 1]} : vector<1x40xf32> to vector<1x8xf32>
    %c3_i32 = arith.constant 3 : i32
    %26 = vector.broadcast %c3_i32 : i32 to vector<5x8xi32>
    %27 = arith.cmpi eq, %5, %26 : vector<5x8xi32>
    %28 = vector.shape_cast %25 : vector<1x8xf32> to vector<1x8xf32>
    %29 = vector.broadcast %28 : vector<1x8xf32> to vector<5x8xf32>
    %30 = arith.select %27, %29, %24 : vector<5x8xi1>, vector<5x8xf32>
    %31 = vector.extract_strided_slice %4 {offsets = [0, 32], sizes = [1, 8], strides = [1, 1]} : vector<1x40xf32> to vector<1x8xf32>
    %c4_i32 = arith.constant 4 : i32
    %32 = vector.broadcast %c4_i32 : i32 to vector<5x8xi32>
    %33 = arith.cmpi eq, %5, %32 : vector<5x8xi32>
    %34 = vector.shape_cast %31 : vector<1x8xf32> to vector<1x8xf32>
    %35 = vector.broadcast %34 : vector<1x8xf32> to vector<5x8xf32>
    %36 = arith.select %33, %35, %30 : vector<5x8xi1>, vector<5x8xf32>
    %37 = tpu.iota {dimensions = array<i32: 1>} : vector<5x8xi32>
    %cst_5 = arith.constant dense<0xFF800000> : vector<5xf32>
    %38 = vector.multi_reduction <maximumf>, %36, %cst_5 [1] : vector<5x8xf32> to vector<5xf32>
    %39 = vector.shape_cast %38 : vector<5xf32> to vector<5x1xf32>
    %40 = vector.broadcast %39 : vector<5x1xf32> to vector<5x8xf32>
    %41 = arith.cmpf oeq, %36, %40 : vector<5x8xf32>
    %c8_i32 = arith.constant 8 : i32
    %42 = vector.broadcast %c8_i32 : i32 to vector<5x8xi32>
    %43 = arith.select %41, %37, %42 : vector<5x8xi1>, vector<5x8xi32>
    %cst_6 = arith.constant dense<2147483647> : vector<5xi32>
    %44 = vector.multi_reduction <minsi>, %43, %cst_6 [1] : vector<5x8xi32> to vector<5xi32>
    %45 = vector.shape_cast %44 : vector<5xi32> to vector<5x1xi32>
    %46 = vector.broadcast %45 : vector<5x1xi32> to vector<5x8xi32>
    %47 = arith.cmpi eq, %37, %46 : vector<5x8xi32>
    %48 = arith.extui %47 : vector<5x8xi1> to vector<5x8xi32>
    %49 = arith.sitofp %48 : vector<5x8xi32> to vector<5x8xf32>
    %c0_7 = arith.constant 0 : index
    %c40 = arith.constant 40 : index
    %50 = vector.load %arg1[%c0_7, %c40] : memref<33x48xf32, #tpu.memory_space<vmem>>, vector<5x8xf32>
    %cst_8 = arith.constant dense<0.000000e+00> : vector<8xf32>
    %51 = vector.multi_reduction <add>, %49, %cst_8 [0] : vector<5x8xf32> to vector<8xf32>
    %52 = vector.shape_cast %51 : vector<8xf32> to vector<1x8xf32>
    %53 = arith.mulf %50, %49 : vector<5x8xf32>
    %cst_9 = arith.constant dense<0.000000e+00> : vector<8xf32>
    %54 = vector.multi_reduction <add>, %53, %cst_9 [0] : vector<5x8xf32> to vector<8xf32>
    %55 = vector.shape_cast %54 : vector<8xf32> to vector<1x8xf32>
    %cst_10 = arith.constant 1.000000e+00 : f32
    %56 = vector.broadcast %cst_10 : f32 to vector<1x8xf32>
    %57 = arith.maximumf %52, %56 : vector<1x8xf32>
    %cst_11 = arith.constant 1.000000e+00 : f32
    %58 = vector.broadcast %cst_11 : f32 to vector<1x8xf32>
    %59 = arith.addf %52, %58 : vector<1x8xf32>
    %60 = arith.mulf %57, %59 : vector<1x8xf32>
    %cst_12 = arith.constant 0.000000e+00 : f32
    %61 = vector.broadcast %cst_12 : f32 to vector<1x8xf32>
    %62 = arith.cmpf ogt, %52, %61 : vector<1x8xf32>
    %cst_13 = arith.constant 5.000000e-01 : f32
    %63 = vector.broadcast %cst_13 : f32 to vector<1x8xf32>
    %64 = arith.addf %52, %63 : vector<1x8xf32>
    %65 = arith.mulf %55, %64 : vector<1x8xf32>
    %66 = arith.divf %65, %60 : vector<1x8xf32>
    %cst_14 = arith.constant 0xFF800000 : f32
    %67 = vector.broadcast %cst_14 : f32 to vector<1x8xf32>
    %68 = arith.select %62, %66, %67 : vector<1x8xi1>, vector<1x8xf32>
    %cst_15 = arith.constant dense<0xFF800000> : vector<1xf32>
    %69 = vector.multi_reduction <maximumf>, %68, %cst_15 [1] : vector<1x8xf32> to vector<1xf32>
    %70 = vector.shape_cast %69 : vector<1xf32> to vector<1x1xf32>
    %71 = tpu.iota {dimensions = array<i32: 1>} : vector<1x8xi32>
    %72 = vector.broadcast %70 : vector<1x1xf32> to vector<1x8xf32>
    %73 = arith.cmpf oeq, %68, %72 : vector<1x8xf32>
    %c8_i32_16 = arith.constant 8 : i32
    %74 = vector.broadcast %c8_i32_16 : i32 to vector<1x8xi32>
    %75 = arith.select %73, %71, %74 : vector<1x8xi1>, vector<1x8xi32>
    %cst_17 = arith.constant dense<2147483647> : vector<1xi32>
    %76 = vector.multi_reduction <minsi>, %75, %cst_17 [1] : vector<1x8xi32> to vector<1xi32>
    %77 = vector.shape_cast %76 : vector<1xi32> to vector<1x1xi32>
    %c0_18 = arith.constant 0 : index
    %c0_19 = arith.constant 0 : index
    %78 = vector.load %arg2[%c0_18, %c0_19] : memref<1x1xi32, #tpu.memory_space<vmem>>, vector<1x1xi32>
    tpu.vector_store %arg2[%c0_18, %c0_19], %77 {strides = array<i32>} : memref<1x1xi32, #tpu.memory_space<vmem>>, vector<1x1xi32>,
    return
  }
}

</mosaic_0001>

<bundles_post_ra>
// kernel: forward.1
= control target key start
LH: loop header
LB: loop body
LE: loop exit
PB: predicated region body
PF: predicated region fallthrough
CT: control target
= control target key end

     0   :  { %7 = vsyncpa [#allocation3], 0  ;;  %s450_s0 = inlined_call_operand.hbm [shape: f32[1,32], index: 0, kind: input, shape index: {}]   ;;  %s451_s1 = inlined_call_operand.hbm [shape: f32[33,48], index: 1, kind: input, shape index: {}]   ;;  %s452_s2 = inlined_call_operand.hbm [shape: s32[1,1], index: 2, kind: output, shape index: {}]  }
   0x1   :  { %8 = vsyncpa [#allocation6], 0 }
   0x2   :  { %9 = vsyncpa [#allocation4], 0  ;;  %s369_s9 = smov [#allocation2]   ;;  %s370_s11 = smov [#allocation5]  }
   0x3   :  { %s16_s10 = sshll.u32 %s369_s9, 4  ;;  %s25_s12 = sshll.u32 %s370_s11, 4  ;;  %s17_s10 = int_to_ptr.vmem [resolvable:$true] %s16_s10  ;;  %s395_s12 = int_to_ptr.vmem [resolvable:$true] %s25_s12 }
   0x4   :  { %s297_s15 = scalar_lea.hbm %s450_s0, 16 }
   0x5   :  { %p298_p0 = scmp.ne.s32.totalorder %s450_s0, %s297_s15  ;;  %p301_p1 = scmp.lt.u32.totalorder %s297_s15, %s450_s0 }
   0x7   :  { %p303_p2 = pnand %p301_p1, %p298_p0 }
   0x9   :  { %306 = shalt.err (!%p303_p2)
}
   0xa   :  { %s307_s20 = scalar_lea.vmem %s17_s10, 16  ;;  %s311_s21 = scalar_lea.vmem %s17_s10, 32 }
   0xb   :  { %p308_p3 = scmp.ne.s32.totalorder %s17_s10, %s307_s20  ;;  %p312_p4 = scmp.lt.s32.totalorder %s17_s10, %s17_s10 }
   0xc   :  { %p313_p5 = scmp.lt.s32.totalorder %s311_s21, %s307_s20 }
   0xe   :  { %p314_p6 = por %p313_p5, %p312_p4 }
  0x10   :  { %p315_p7 = pnand %p314_p6, %p308_p3 }
  0x12   :  { %318 = shalt.err (!%p315_p7)
}
  0x13   :  { %19 = dma.hbm_to_vmem [thread:$0]  %s450_s0, 16, %s17_s10, [#allocation3]  }
  0x14   :  { %s319_s26 = scalar_lea.hbm %s451_s1, 640 }
  0x15   :  { %p320_p8 = scmp.ne.s32.totalorder %s451_s1, %s319_s26  ;;  %p323_p9 = scmp.lt.u32.totalorder %s319_s26, %s451_s1 }
  0x17   :  { %p325_p10 = pnand %p323_p9, %p320_p8 }
  0x19   :  { %328 = shalt.err (!%p325_p10)
}
  0x1a   :  { %s329_s3 = scalar_lea.vmem %s395_s12, 640  ;;  %p334_p12 = scmp.lt.s32.totalorder %s395_s12, %s395_s12 }
  0x1b   :  { %p330_p11 = scmp.ne.s32.totalorder %s395_s12, %s329_s3  ;;  %p335_p13 = scmp.lt.s32.totalorder %s329_s3, %s329_s3 }
  0x1d   :  { %p336_p0 = por %p335_p13, %p334_p12 }
  0x1f   :  { %p337_p1 = pnand %p336_p0, %p330_p11 }
  0x21   :  { %340 = shalt.err (!%p337_p1)
}
  0x22   :  { %s371_s0 = smov 128   ;;  %s372_s4 = smov 8  }
  0x23   :  { %31 = dma.hbm_to_vmem [thread:$0]  %s451_s1, 640, %s395_s12, [#allocation6], %s371_s0, %s371_s0, %s372_s4  }
  0x24   :  { %363 = dma.done.wait [#allocation3], 16  }
  0x25   :  { %364 = vsyncadd [#allocation3], 4294967280 }
  0x26   :  { %365 = dma.done.wait [#allocation6], 640  }
  0x27   :  { %366 = vsyncadd [#allocation6], 4294966656  ;;  %v373_v0 = vmov 0.0|0.0   ;;  %vm374_vm0 = vmmov 0   ;;  %v375_v1 = vmov 0.0   ;;  %v38_v2 = vld [vmem:[#allocation5] sm:$0xff]  ;;  %v118_v9 = vlaneseq }
  0x28   :  { %278 = vmatprep.subr.bf16.mxu0 %v373_v0  ;;  %275 = vmatprep.mubr.msk.f32.mxu0 %vm374_vm0, %v375_v1  ;;  %v39_v3 = vld [vmem:[#allocation5 + $0x8] sm:$0xff]  ;;  %v40_v4 = vld [vmem:[#allocation5 + $0x10] sm:$0xff]  ;;  %v41_v6 = vld [vmem:[#allocation5 + $0x18] sm:$0xff]  ;;  %vm44_vm1 = vcmask 261120   ;;  %s376_s1 = smov 32   ;;  %vm152_vm7 = vcmask 323840  }
  0x29   :  { %v279_v5 = vpack.c.bf16 %v39_v3, %v38_v2  ;;  %v282_v7 = vpack.c.bf16 %v41_v6, %v40_v4  ;;  %v42_v8 = vld [vmem:[#allocation2] sm:$0x1]  ;;  %v119_v10 = vshrl.u32 %v118_v9, 7  ;;  %v43_v11 = vld [vmem:[#allocation5 + $0x20] sm:$0x1]  ;;  %v432_v24 = vand.u32 127, %v118_v9 }
  0x2a   :  { %vm179_vm10 = vcmask 61440   ;;  %s377_s7 = smov 40   ;;  %v178_v55 = vld [vmem:[#allocation5] sm:$0x1f]  ;;  %vm192_vm12 = vcmask 389440   ;;  %s378_s8 = smov 88  }
  0x2b   :  { %280 = vmatpush3.bf16.msra.mxu0 %v279_v5  ;;  %v123_v12 = vsub.s32 0, %v119_v10  ;;  %vm120_vm2 = vcmp.eq.s32.totalorder %v119_v10, 0  ;;  %vm126_vm3 = vcmp.eq.s32.totalorder %v119_v10, 1  ;;  %vm132_vm4 = vcmp.eq.s32.totalorder %v119_v10, 2  ;;  %s379_s9 = smov [#allocation7]  }
  0x2c   :  { %281 = vmatprep.subr.bf16.mxu0 %v373_v0  ;;  %vm138_vm5 = vcmp.eq.s32.totalorder %v119_v10, 3  ;;  %vm144_vm6 = vcmp.eq.s32.totalorder %v119_v10, 4  ;;  %vm221_vm13 = vcmask 57344   ;;  %s250_s10 = sshll.u32 %s379_s9, 4  ;;  %s251_s10 = int_to_ptr.vmem [resolvable:$true] %s250_s10 }
  0x2d   :  { %s341_s11 = scalar_lea.vmem %s251_s10, 16  ;;  %s345_s12 = scalar_lea.vmem %s251_s10, 32 }
  0x2e   :  { %p342_p2 = scmp.ne.s32.totalorder %s251_s10, %s341_s11  ;;  %p346_p3 = scmp.lt.s32.totalorder %s251_s10, %s251_s10 }
  0x2f   :  { %283 = vmatpush3.bf16.msra.mxu0 %v282_v7  ;;  %p347_p4 = scmp.lt.s32.totalorder %s345_s12, %s341_s11 }
  0x31   :  { %p348_p5 = por %p347_p4, %p346_p3 }
  0x32   :  { %276 = vmatmul.mubr.msk.f32.vlgmr.msra.gmra.mrb[0].mxu0 %vm44_vm1, %v42_v8  ;;  %vm242_vm1 = vcmask 0  }
  0x33   :  { %p349_p6 = pnand %p348_p5, %p342_p2 }
 0x105   :  { %v114_v13 = vpop.f32.mrb[0].mxu0 }
 0x106   :  { %v115_v14 = vadd.f32 %v114_v13, %v43_v11  ;;  %v277_v15 = vpop.f32.mrb[1].mxu0 }
 0x108   :  { %v124_v16 = vrot.slane %v115_v14, %v123_v12 }
 0x10a   :  { %v125_v17 = vsel %vm120_vm2, %v124_v16, 0.0 }
 0x10b   :  { %128 = vrot.lane.b32.xlu0 %v125_v17, %s372_s4 }
 0x17d   :  { %v129_v18 = vpop.permute.xlu0 %128 }
 0x17e   :  { %v131_v19 = vsel %vm126_vm3, %v124_v16, %v129_v18 }
 0x17f   :  { %134 = vrot.lane.b32.xlu0 %v131_v19, %s372_s4 }
 0x1f1   :  { %v135_v20 = vpop.permute.xlu0 %134 }
 0x1f2   :  { %v137_v21 = vsel %vm132_vm4, %v124_v16, %v135_v20 }
 0x1f3   :  { %140 = vrot.lane.b32.xlu1 %v137_v21, %s372_s4 }
 0x265   :  { %v141_v22 = vpop.permute.xlu1 %140 }
 0x266   :  { %v143_v23 = vsel %vm138_vm5, %v124_v16, %v141_v22 }
 0x267   :  { %146 = vrot.lane.b32.xlu1 %v143_v23, %s372_s4 }
 0x26b   :  { %157 = vrot.lane.b32.xlu1 %v432_v24, %s376_s1 }
 0x2d9   :  { %v147_v25 = vpop.permute.xlu1 %146 }
 0x2da   :  { %v149_v26 = vsel %vm144_vm6, %v124_v16, %v147_v25 }
 0x2db   :  { %v153_v27 = vsel %vm152_vm7, %v149_v26, -inf }
 0x2dc   :  { %154 = vmax.xlane.f32.xlu0 %v153_v27 }
 0x2dd   :  { %v158_v28 = vpop.permute.xlu1 %157 }
 0x369   :  { %v155_v29 = vpop.xlane.xlu0 %154 }
 0x36a   :  { %vm156_vm8 = vcmp.eq.f32.partialorder %v149_v26, %v155_v29 }
 0x36b   :  { %v159_v30 = vsel %vm156_vm8, %v158_v28, 8 }
 0x36c   :  { %v160_v31 = vsel %vm152_vm7, %v159_v30, 2147483647 }
 0x36d   :  { %v162_v32 = vshra.s32 %v160_v31, 16  ;;  %v161_v34 = vand.u32 65535, %v160_v31 }
 0x36f   :  { %v164_v33 = vcvt.s32.f32 %v162_v32  ;;  %v163_v36 = vcvt.s32.f32 %v161_v34 }
 0x371   :  { %165 = vmin.xlane.f32.xlu1 %v164_v33 }
 0x3fe   :  { %v166_v35 = vpop.xlane.xlu1 %165 }
 0x3ff   :  { %vm167_vm9 = vcmp.eq.f32.partialorder %v164_v33, %v166_v35  ;;  %v172_v38 = vcvt.f32.s32 %v166_v35 }
 0x400   :  { %v168_v37 = vsel %vm167_vm9, %v163_v36, inf }
 0x401   :  { %169 = vmin.xlane.f32.xlu0 %v168_v37  ;;  %v173_v40 = vshll.u32 %v172_v38, 16 }
 0x48e   :  { %v170_v39 = vpop.xlane.xlu0 %169 }
 0x48f   :  { %v171_v41 = vcvt.f32.s32 %v170_v39 }
 0x491   :  { %v174_v42 = vadd.s32 %v173_v40, %v171_v41 }
 0x493   :  { %vm175_vm11 = vcmp.eq.s32.totalorder %v432_v24, %v174_v42 }
 0x494   :  { %v261_v43 = vsel %vm175_vm11, 1.0, %v375_v1 }
 0x495   :  { %188 = vrot.lane.b32.xlu0 %v261_v43, %s377_s7  ;;  %v180_v44 = vsel %vm179_vm10, %v261_v43, 0.0 }
 0x496   :  { %v181_v45 = vrot.slane %v180_v44, 4 }
 0x498   :  { %v182_v46 = vadd.f32 %v181_v45, %v180_v44 }
 0x49a   :  { %v183_v47 = vrot.slane %v182_v46, 2 }
 0x49c   :  { %v184_v48 = vadd.f32 %v183_v47, %v182_v46 }
 0x49e   :  { %v185_v49 = vrot.slane %v184_v48, 1 }
 0x4a0   :  { %v186_v50 = vadd.f32 %v185_v49, %v184_v48 }
 0x4a2   :  { %v204_v51 = vadd.f32 0.5, %v186_v50  ;;  %v200_v52 = vmax.f32 %v186_v50, 1.0  ;;  %v201_v53 = vadd.f32 1.0, %v186_v50  ;;  %vm203_vm14 = vcmp.gt.f32.partialorder %v186_v50, 0.0 }
 0x4a4   :  { %206 = vrot.lane.b32.xlu0 %v204_v51, %s377_s7  ;;  %v202_v54 = vmul.f32 %v201_v53, %v200_v52 }
 0x4a6   :  { %211 = vrot.lane.b32.xlu1 %v202_v54, %s377_s7 }
 0x507   :  { %v189_v56 = vpop.permute.xlu0 %188 }
 0x508   :  { %v191_v57 = vmul.f32 %v189_v56, %v178_v55 }
 0x50a   :  { %v193_v58 = vsel %vm192_vm12, %v191_v57, 0.0 }
 0x50b   :  { %v194_v59 = vrot.slane %v193_v58, 4 }
 0x50d   :  { %v195_v60 = vadd.f32 %v194_v59, %v193_v58 }
 0x50f   :  { %v196_v61 = vrot.slane %v195_v60, 2 }
 0x511   :  { %v197_v62 = vadd.f32 %v196_v61, %v195_v60 }
 0x513   :  { %v198_v0 = vrot.slane %v197_v62, 1 }
 0x515   :  { %v199_v1 = vadd.f32 %v198_v0, %v197_v62 }
 0x516   :  { %v207_v2 = vpop.permute.xlu0 %206 }
 0x517   :  { %v209_v3 = vmul.f32 %v207_v2, %v199_v1 }
 0x518   :  { %v212_v63 = vpop.permute.xlu1 %211 }
 0x519   :  { %295 = vrcp.f32 %v212_v63 }
 0x523   :  { %v296_v4 = vpop.eup %295 }
 0x524   :  { %v215_v5 = vmul.f32 %v296_v4, %v209_v3 }
 0x526   :  { %217 = vrot.lane.b32.xlu1 %v215_v5, %s378_s8 }
 0x598   :  { %v218_v6 = vpop.permute.xlu1 %217 }
 0x599   :  { %v220_v7 = vsel %vm203_vm14, %v218_v6, -inf }
 0x59a   :  { %v222_v8 = vsel %vm221_vm13, %v220_v7, -inf }
 0x59b   :  { %223 = vmax.xlane.f32.xlu0 %v222_v8 }
 0x628   :  { %v224_v9 = vpop.xlane.xlu0 %223 }
 0x629   :  { %vm225_vm15 = vcmp.eq.f32.partialorder %v220_v7, %v224_v9 }
 0x62a   :  { %v226_v10 = vsel %vm225_vm15, %v432_v24, 8 }
 0x62b   :  { %v227_v11 = vsel %vm221_vm13, %v226_v10, 2147483647 }
 0x62c   :  { %v229_v12 = vshra.s32 %v227_v11, 16  ;;  %v228_v14 = vand.u32 65535, %v227_v11 }
 0x62e   :  { %v231_v13 = vcvt.s32.f32 %v229_v12  ;;  %v230_v16 = vcvt.s32.f32 %v228_v14 }
 0x630   :  { %232 = vmin.xlane.f32.xlu1 %v231_v13 }
 0x6bd   :  { %v233_v15 = vpop.xlane.xlu1 %232 }
 0x6be   :  { %vm234_vm0 = vcmp.eq.f32.partialorder %v231_v13, %v233_v15  ;;  %v239_v18 = vcvt.f32.s32 %v233_v15 }
 0x6bf   :  { %v235_v17 = vsel %vm234_vm0, %v230_v16, inf }
 0x6c0   :  { %236 = vmin.xlane.f32.xlu0 %v235_v17  ;;  %v240_v20 = vshll.u32 %v239_v18, 16 }
 0x74d   :  { %v237_v19 = vpop.xlane.xlu0 %236 }
 0x74e   :  { %v238_v21 = vcvt.f32.s32 %v237_v19 }
 0x750   :  { %v241_v22 = vadd.s32 %v240_v20, %v238_v21 }
 0x752   :  { %243 = vst.msk [vmem:[#allocation7] sm:$0x1] %vm242_vm1, %v241_v22 }
 0x753   :  { %352 = shalt.err (!%p349_p6)
}
 0x754   :  { %s353_s15 = scalar_lea.hbm %s452_s2, 16 }
 0x755   :  { %p354_p7 = scmp.ne.s32.totalorder %s452_s2, %s353_s15  ;;  %p357_p8 = scmp.lt.u32.totalorder %s353_s15, %s452_s2 }
 0x757   :  { %p359_p9 = pnand %p357_p8, %p354_p7 }
 0x759   :  { %362 = shalt.err (!%p359_p9)
}
 0x75a   :  { %253 = dma.vmem_to_hbm [thread:$0]  %s251_s10, 16, %s452_s2, [#allocation4]  }
 0x75b   :  { %367 = dma.done.wait [#allocation4], 16  }
 0x75c   :  { %368 = vsyncadd [#allocation4], 4294967280 }
 0x75d   :  { %257 = vsyncpa [#allocation3], 1 }
 0x75e   :  { %258 = vsyncpa [#allocation6], 1 }
 0x75f   :  { %259 = vsyncpa [#allocation4], 1 }

</bundles_post_ra>
